<compile_context>
chip_gen: v5e
topology: v5e:2x2
jax: 0.10.0
libtpu: 0.0.40
codegen_flags: <defaults>
</compile_context>

<pallas_src>
import functools

import jax
import jax.numpy as jnp
from jax import lax
from jax.experimental import pallas as pl
from jax.experimental.pallas import tpu as pltpu

EPS = 1e-5
LANE = 128
SUBPACK = 16   # bf16 sublane packing granularity (the only K padding applied)
N_SPLIT = 2    # leading "parallel" axis: v7x megacore sharding of pass 1


def _round_up(x, m):
    return ((x + m - 1) // m) * m


# ---------------------------------------------------------------------------
# Kernels
# ---------------------------------------------------------------------------
def _conv_stats_kernel(wt_ref, p_ref, y_ref, sum_ref, sq_ref):
    """Conv tile (MXU) + per-channel sum / sum-of-squares + bf16 intermediate.

    wt_ref : (C_out, K_pad)   bf16  grid-invariant, stays resident in VMEM
    p_ref  : (K_pad, tile_m)  bf16  transposed im2col tile (lane-dense)
    y_ref  : (C_out, tile_m)  bf16  conv intermediate (real channels only)
    sum_ref/sq_ref : (1, C_out, 1) f32  per-core resident accumulators
    """
    @pl.when(pl.program_id(1) == 0)
    def _():
        sum_ref[...] = jnp.zeros_like(sum_ref)
        sq_ref[...] = jnp.zeros_like(sq_ref)

    acc = jnp.dot(wt_ref[...], p_ref[...],
                  preferred_element_type=jnp.float32)      # (C_out, tile_m) f32
    y_ref[...] = acc.astype(y_ref.dtype)
    # Zero-padded M columns contribute 0 to both statistics.
    # TODO(synk): switch to a shifted/centered accumulation if M grows enough
    # for E[x^2]-E[x]^2 cancellation to matter.
    sum_ref[...] += jnp.sum(acc, axis=1, keepdims=True)[None]
    sq_ref[...] += jnp.sum(acc * acc, axis=1, keepdims=True)[None]


def _bn_relu_kernel(y_ref, s_ref, b_ref, o_ref):
    """Pure-VPU folded BatchNorm affine + ReLU over the conv intermediate."""
    y = y_ref[...].astype(jnp.float32)
    o_ref[...] = jnp.maximum(y * s_ref[...] + b_ref[...], 0.0).astype(o_ref.dtype)


# ---------------------------------------------------------------------------
# Transposed im2col: (K, M), K ordered (c_in, kh, kw), M ordered (n, h, w)
# ---------------------------------------------------------------------------
def _im2col_t(x_nchw, kh, kw, stride, padding):
    n, c, h, w = x_nchw.shape
    h_out = (h + 2 * padding - kh) // stride + 1
    w_out = (w + 2 * padding - kw) // stride + 1
    xp = jnp.pad(x_nchw, ((0, 0), (0, 0), (padding, padding), (padding, padding)))
    xp = jnp.transpose(xp, (1, 0, 2, 3))        # (C, N, Hp, Wp): one small transpose
    slabs = [xp[:, :, di:di + stride * h_out:stride, dj:dj + stride * w_out:stride]
             for di in range(kh) for dj in range(kw)]
    pt = jnp.stack(slabs, axis=1)               # (C, kh*kw, N, h_out, w_out)
    return pt.reshape(c * kh * kw, n * h_out * w_out), h_out, w_out


# ---------------------------------------------------------------------------
# Public wrapper (NCHW in / NCHW out, matching the PyTorch module)
# ---------------------------------------------------------------------------
@functools.partial(jax.jit, static_argnames=("stride", "padding", "tile_m"))
def basic_conv2d(x, weight, gamma, beta, *, stride=1, padding=1, tile_m=2048):
    """x: (N, C_in, H, W); weight: (C_out, C_in, kH, kW); gamma/beta: (C_out,)."""
    n = x.shape[0]
    c_out, c_in, kh, kw = weight.shape

    pt, h_out, w_out = _im2col_t(x, kh, kw, stride, padding)
    k, m = pt.shape

    # K padded only to the bf16 packing requirement; M padded to the tiling.
    k_pad = _round_up(k, SUBPACK)
    tile_m = min(tile_m, max(LANE, _round_up(-(-m // N_SPLIT), LANE)))
    m_pad = _round_up(m, N_SPLIT * tile_m)
    inner = m_pad // (N_SPLIT * tile_m)

    # bf16 MXU operands; f32 accumulation inside the kernel.
    pt_bf16 = jnp.pad(pt.astype(jnp.bfloat16), ((0, k_pad - k), (0, m_pad - m)))
    # weight (C_out, C_in, kH, kW) -> (C_out, K) with the same (c_in, kh, kw) order.
    wt_bf16 = jnp.pad(weight.reshape(c_out, k).astype(jnp.bfloat16),
                      ((0, 0), (0, k_pad - k)))

    vmem_limit = 32 * 1024 * 1024  # also within the v7x scoped budget
    # NOTE: at these channel counts the layer is HBM-bound; for large C_in/C_out
    # instances tile K / C_out toward 256 on v6e/v7x (256x256 MXU), 128 on v5e.

    # ---- pass 1: conv + per-channel sum / sum-of-squares + bf16 intermediate
    conv_t, sums, sumsq = pl.pallas_call(
        _conv_stats_kernel,
        out_shape=(jax.ShapeDtypeStruct((c_out, m_pad), jnp.bfloat16),
                   jax.ShapeDtypeStruct((N_SPLIT, c_out, 1), jnp.float32),
                   jax.ShapeDtypeStruct((N_SPLIT, c_out, 1), jnp.float32)),
        grid_spec=pltpu.PrefetchScalarGridSpec(
            num_scalar_prefetch=0,
            grid=(N_SPLIT, inner),
            in_specs=[pl.BlockSpec((c_out, k_pad), lambda c, i: (0, 0)),
                      pl.BlockSpec((k_pad, tile_m),
                                   lambda c, i: (0, c * inner + i))],
            out_specs=[pl.BlockSpec((c_out, tile_m),
                                    lambda c, i: (0, c * inner + i)),
                       pl.BlockSpec((1, c_out, 1), lambda c, i: (c, 0, 0)),
                       pl.BlockSpec((1, c_out, 1), lambda c, i: (c, 0, 0))]),
        compiler_params=pltpu.CompilerParams(
            dimension_semantics=("parallel", "arbitrary"),
            vmem_limit_bytes=vmem_limit),
        cost_estimate=pl.CostEstimate(
            flops=2 * m_pad * k_pad * c_out, transcendentals=0,
            bytes_accessed=(m_pad * k_pad * 2 + c_out * k_pad * 2
                            + m_pad * c_out * 2 + 2 * N_SPLIT * c_out * 4)),
    )(wt_bf16, pt_bf16)

    # Fold train-mode (biased) batch statistics into a single per-channel FMA.
    # TODO(synk): running_mean / running_var buffer updates of nn.BatchNorm2d
    # are not produced (forward output does not depend on them).
    m_f = jnp.float32(m)
    sum_tot = jnp.sum(sums, axis=0)              # (C_out, 1)
    sq_tot = jnp.sum(sumsq, axis=0)              # (C_out, 1)
    mean = sum_tot / m_f
    var = jnp.maximum(sq_tot / m_f - mean * mean, 0.0)
    inv_std = lax.rsqrt(var + EPS)
    scale = gamma.astype(jnp.float32).reshape(c_out, 1) * inv_std
    bias = beta.astype(jnp.float32).reshape(c_out, 1) - mean * scale

    # ---- pass 2: fused BN affine + ReLU (VPU only, no patch/weight re-read)
    out_t = pl.pallas_call(
        _bn_relu_kernel,
        out_shape=jax.ShapeDtypeStruct((c_out, m_pad), jnp.float32),
        grid_spec=pltpu.PrefetchScalarGridSpec(
            num_scalar_prefetch=0,
            grid=(m_pad // tile_m,),
            in_specs=[pl.BlockSpec((c_out, tile_m), lambda i: (0, i)),
                      pl.BlockSpec((c_out, 1), lambda i: (0, 0)),
                      pl.BlockSpec((c_out, 1), lambda i: (0, 0))],
            out_specs=pl.BlockSpec((c_out, tile_m), lambda i: (0, i))),
        compiler_params=pltpu.CompilerParams(
            dimension_semantics=("parallel",),
            vmem_limit_bytes=vmem_limit),
        cost_estimate=pl.CostEstimate(
            flops=2 * m_pad * c_out, transcendentals=0,
            bytes_accessed=m_pad * c_out * 2 + m_pad * c_out * 4 + 2 * c_out * 4),
    )(conv_t, scale, bias)

    # Epilogue touches only real data: (C_out, M) -> (N, C_out, H_out, W_out).
    out = out_t[:, :m].reshape(c_out, n, h_out, w_out)
    return jnp.transpose(out, (1, 0, 2, 3))


# ---------------------------------------------------------------------------
# Pure-JAX reference (bf16 conv inputs, f32 accumulation — same numerics)
# ---------------------------------------------------------------------------
def _reference(x, weight, gamma, beta, *, stride=1, padding=1):
    conv = lax.conv_general_dilated(
        x.astype(jnp.bfloat16), weight.astype(jnp.bfloat16),
        window_strides=(stride, stride),
        padding=((padding, padding), (padding, padding)),
        dimension_numbers=("NCHW", "OIHW", "NCHW"),
        preferred_element_type=jnp.float32)
    mean = jnp.mean(conv, axis=(0, 2, 3), keepdims=True)
    var = jnp.mean((conv - mean) ** 2, axis=(0, 2, 3), keepdims=True)
    y = (conv - mean) * lax.rsqrt(var + EPS)
    y = y * gamma.reshape(1, -1, 1, 1) + beta.reshape(1, -1, 1, 1)
    return jnp.maximum(y, 0.0)


if __name__ == "__main__":
    key = jax.random.PRNGKey(0)
    k_x, k_w, k_g, k_b = jax.random.split(key, 4)

    # BasicConv2d(in_channels=4, out_channels=8, kernel_size=3, stride=1, padding=1)
    N, C_IN, H, W = 2, 4, 16, 16
    C_OUT, KH, KW = 8, 3, 3

    x = jax.random.normal(k_x, (N, C_IN, H, W), dtype=jnp.float32)
    weight = jax.random.normal(k_w, (C_OUT, C_IN, KH, KW), dtype=jnp.float32) * 0.1
    gamma = jax.random.uniform(k_g, (C_OUT,), dtype=jnp.float32, minval=0.5, maxval=1.5)
    beta = jax.random.normal(k_b, (C_OUT,), dtype=jnp.float32) * 0.1

    out = basic_conv2d(x, weight, gamma, beta, stride=1, padding=1)
    out = jax.block_until_ready(out)

    ref = _reference(x, weight, gamma, beta, stride=1, padding=1)
    assert out.shape == (N, C_OUT, H, W), out.shape
    err = float(jnp.max(jnp.abs(out - ref)))
    assert jnp.allclose(out, ref, atol=2e-2, rtol=2e-2), err

    print("KERNEL_OK")
</pallas_src>

<mosaic_0001>
module attributes {stable_mosaic.version = 11 : i64} {
  func.func @_conv_stats_kernel(%arg0: i32, %arg1: i32, %arg2: memref<8x48xbf16, #tpu.memory_space<vmem>>, %arg3: memref<48x256xbf16, #tpu.memory_space<vmem>>, %arg4: memref<8x256xbf16, #tpu.memory_space<vmem>>, %arg5: memref<1x8x1xf32, #tpu.memory_space<vmem>>, %arg6: memref<1x8x1xf32, #tpu.memory_space<vmem>>) attributes {dimension_semantics = [#tpu.dimension_semantics<parallel>, #tpu.dimension_semantics<arbitrary>], iteration_bounds = array<i64: 2, 1>, scalar_prefetch = 0 : i64, scratch_operands = 0 : i64, tpu.core_type = #tpu.core_type<tc>, window_params = [{pipeline_mode = #tpu.pipeline_mode<synchronous>, transform_indices = @transform_0, window_bounds = array<i64: 8, 48>}, {transform_indices = @transform_1, window_bounds = array<i64: 48, 256>}, {transform_indices = @transform_2, window_bounds = array<i64: 8, 256>}, {transform_indices = @transform_3, window_bounds = array<i64: 1, 8, 1>}, {transform_indices = @transform_4, window_bounds = array<i64: 1, 8, 1>}]} {
    %c0_i32 = arith.constant 0 : i32
    %0 = arith.cmpi eq, %arg1, %c0_i32 : i32
    %1 = arith.extui %0 : i1 to i32
    %c0_i32_0 = arith.constant 0 : i32
    %2 = arith.cmpi ne, %1, %c0_i32_0 : i32
    scf.if %2 {
      %cst_20 = arith.constant 0.000000e+00 : f32
      %21 = vector.broadcast %cst_20 : f32 to vector<1x8x1xf32>
      %c0_21 = arith.constant 0 : index
      %c0_22 = arith.constant 0 : index
      %c0_23 = arith.constant 0 : index
      %22 = vector.load %arg5[%c0_21, %c0_22, %c0_23] : memref<1x8x1xf32, #tpu.memory_space<vmem>>, vector<1x8x1xf32>
      tpu.vector_store %arg5[%c0_21, %c0_22, %c0_23], %21 {strides = array<i32>} : memref<1x8x1xf32, #tpu.memory_space<vmem>>, vector<1x8x1xf32>,
      %cst_24 = arith.constant 0.000000e+00 : f32
      %23 = vector.broadcast %cst_24 : f32 to vector<1x8x1xf32>
      %c0_25 = arith.constant 0 : index
      %c0_26 = arith.constant 0 : index
      %c0_27 = arith.constant 0 : index
      %24 = vector.load %arg6[%c0_25, %c0_26, %c0_27] : memref<1x8x1xf32, #tpu.memory_space<vmem>>, vector<1x8x1xf32>
      tpu.vector_store %arg6[%c0_25, %c0_26, %c0_27], %23 {strides = array<i32>} : memref<1x8x1xf32, #tpu.memory_space<vmem>>, vector<1x8x1xf32>,
    } else {
    }
    %c0 = arith.constant 0 : index
    %c0_1 = arith.constant 0 : index
    %3 = vector.load %arg2[%c0, %c0_1] : memref<8x48xbf16, #tpu.memory_space<vmem>>, vector<8x48xbf16>
    %c0_2 = arith.constant 0 : index
    %c0_3 = arith.constant 0 : index
    %4 = vector.load %arg3[%c0_2, %c0_3] : memref<48x256xbf16, #tpu.memory_space<vmem>>, vector<48x256xbf16>
    %cst = arith.constant dense<0.000000e+00> : vector<8x256xf32>
    %5 = tpu.matmul %3, %4, %cst {dimension_numbers = #tpu.dot_dimension_numbers<[1], [0], [0], [1], [0, 0, 1, 1], [], []>} : vector<8x48xbf16>, vector<48x256xbf16>, vector<8x256xf32> -> vector<8x256xf32>
    %6 = arith.truncf %5 : vector<8x256xf32> to vector<8x256xbf16>
    %c0_4 = arith.constant 0 : index
    %c0_5 = arith.constant 0 : index
    %7 = vector.load %arg4[%c0_4, %c0_5] : memref<8x256xbf16, #tpu.memory_space<vmem>>, vector<8x256xbf16>
    tpu.vector_store %arg4[%c0_4, %c0_5], %6 {strides = array<i32>} : memref<8x256xbf16, #tpu.memory_space<vmem>>, vector<8x256xbf16>,
    %c0_6 = arith.constant 0 : index
    %c0_7 = arith.constant 0 : index
    %c0_8 = arith.constant 0 : index
    %8 = vector.load %arg5[%c0_6, %c0_7, %c0_8] : memref<1x8x1xf32, #tpu.memory_space<vmem>>, vector<1x8x1xf32>
    %cst_9 = arith.constant dense<0.000000e+00> : vector<8xf32>
    %9 = vector.multi_reduction <add>, %5, %cst_9 [1] : vector<8x256xf32> to vector<8xf32>
    %10 = vector.shape_cast %9 : vector<8xf32> to vector<8x1xf32>
    %11 = vector.shape_cast %10 : vector<8x1xf32> to vector<1x8x1xf32>
    %12 = arith.addf %8, %11 : vector<1x8x1xf32>
    %c0_10 = arith.constant 0 : index
    %c0_11 = arith.constant 0 : index
    %c0_12 = arith.constant 0 : index
    %13 = vector.load %arg5[%c0_10, %c0_11, %c0_12] : memref<1x8x1xf32, #tpu.memory_space<vmem>>, vector<1x8x1xf32>
    tpu.vector_store %arg5[%c0_10, %c0_11, %c0_12], %12 {strides = array<i32>} : memref<1x8x1xf32, #tpu.memory_space<vmem>>, vector<1x8x1xf32>,
    %c0_13 = arith.constant 0 : index
    %c0_14 = arith.constant 0 : index
    %c0_15 = arith.constant 0 : index
    %14 = vector.load %arg6[%c0_13, %c0_14, %c0_15] : memref<1x8x1xf32, #tpu.memory_space<vmem>>, vector<1x8x1xf32>
    %15 = arith.mulf %5, %5 : vector<8x256xf32>
    %cst_16 = arith.constant dense<0.000000e+00> : vector<8xf32>
    %16 = vector.multi_reduction <add>, %15, %cst_16 [1] : vector<8x256xf32> to vector<8xf32>
    %17 = vector.shape_cast %16 : vector<8xf32> to vector<8x1xf32>
    %18 = vector.shape_cast %17 : vector<8x1xf32> to vector<1x8x1xf32>
    %19 = arith.addf %14, %18 : vector<1x8x1xf32>
    %c0_17 = arith.constant 0 : index
    %c0_18 = arith.constant 0 : index
    %c0_19 = arith.constant 0 : index
    %20 = vector.load %arg6[%c0_17, %c0_18, %c0_19] : memref<1x8x1xf32, #tpu.memory_space<vmem>>, vector<1x8x1xf32>
    tpu.vector_store %arg6[%c0_17, %c0_18, %c0_19], %19 {strides = array<i32>} : memref<1x8x1xf32, #tpu.memory_space<vmem>>, vector<1x8x1xf32>,
    return
  }
  func.func @transform_0(%arg0: i32, %arg1: i32) -> (i32, i32) {
    %c0_i32 = arith.constant 0 : i32
    %c0_i32_0 = arith.constant 0 : i32
    %c0_i32_1 = arith.constant 0 : i32
    return %c0_i32, %c0_i32_0 : i32, i32
  }
  func.func @transform_1(%arg0: i32, %arg1: i32) -> (i32, i32) {
    %c1_i32 = arith.constant 1 : i32
    %0 = arith.muli %arg0, %c1_i32 : i32
    %1 = arith.addi %0, %arg1 : i32
    %c0_i32 = arith.constant 0 : i32
    %c0_i32_0 = arith.constant 0 : i32
    return %c0_i32, %1 : i32, i32
  }
  func.func @transform_2(%arg0: i32, %arg1: i32) -> (i32, i32) {
    %c1_i32 = arith.constant 1 : i32
    %0 = arith.muli %arg0, %c1_i32 : i32
    %1 = arith.addi %0, %arg1 : i32
    %c0_i32 = arith.constant 0 : i32
    %c0_i32_0 = arith.constant 0 : i32
    return %c0_i32, %1 : i32, i32
  }
  func.func @transform_3(%arg0: i32, %arg1: i32) -> (i32, i32, i32) {
    %c0_i32 = arith.constant 0 : i32
    %c0_i32_0 = arith.constant 0 : i32
    %c0_i32_1 = arith.constant 0 : i32
    return %arg0, %c0_i32, %c0_i32_0 : i32, i32, i32
  }
  func.func @transform_4(%arg0: i32, %arg1: i32) -> (i32, i32, i32) {
    %c0_i32 = arith.constant 0 : i32
    %c0_i32_0 = arith.constant 0 : i32
    %c0_i32_1 = arith.constant 0 : i32
    return %arg0, %c0_i32, %c0_i32_0 : i32, i32, i32
  }
}

module attributes {stable_mosaic.version = 11 : i64} {
  func.func @_bn_relu_kernel(%arg0: i32, %arg1: memref<8x256xbf16, #tpu.memory_space<vmem>>, %arg2: memref<8x1xf32, #tpu.memory_space<vmem>>, %arg3: memref<8x1xf32, #tpu.memory_space<vmem>>, %arg4: memref<8x256xf32, #tpu.memory_space<vmem>>) attributes {dimension_semantics = [#tpu.dimension_semantics<parallel>], iteration_bounds = array<i64: 2>, scalar_prefetch = 0 : i64, scratch_operands = 0 : i64, tpu.core_type = #tpu.core_type<tc>, window_params = [{transform_indices = @transform_0, window_bounds = array<i64: 8, 256>}, {pipeline_mode = #tpu.pipeline_mode<synchronous>, transform_indices = @transform_1, window_bounds = array<i64: 8, 1>}, {pipeline_mode = #tpu.pipeline_mode<synchronous>, transform_indices = @transform_2, window_bounds = array<i64: 8, 1>}, {transform_indices = @transform_3, window_bounds = array<i64: 8, 256>}]} {
    %c0 = arith.constant 0 : index
    %c0_0 = arith.constant 0 : index
    %0 = vector.load %arg1[%c0, %c0_0] : memref<8x256xbf16, #tpu.memory_space<vmem>>, vector<8x256xbf16>
    %1 = arith.extf %0 : vector<8x256xbf16> to vector<8x256xf32>
    %c0_1 = arith.constant 0 : index
    %c0_2 = arith.constant 0 : index
    %2 = vector.load %arg2[%c0_1, %c0_2] : memref<8x1xf32, #tpu.memory_space<vmem>>, vector<8x1xf32>
    %3 = vector.broadcast %2 : vector<8x1xf32> to vector<8x256xf32>
    %4 = arith.mulf %1, %3 : vector<8x256xf32>
    %c0_3 = arith.constant 0 : index
    %c0_4 = arith.constant 0 : index
    %5 = vector.load %arg3[%c0_3, %c0_4] : memref<8x1xf32, #tpu.memory_space<vmem>>, vector<8x1xf32>
    %6 = vector.broadcast %5 : vector<8x1xf32> to vector<8x256xf32>
    %7 = arith.addf %4, %6 : vector<8x256xf32>
    %cst = arith.constant 0.000000e+00 : f32
    %8 = vector.broadcast %cst : f32 to vector<8x256xf32>
    %9 = arith.maximumf %7, %8 : vector<8x256xf32>
    %c0_5 = arith.constant 0 : index
    %c0_6 = arith.constant 0 : index
    %10 = vector.load %arg4[%c0_5, %c0_6] : memref<8x256xf32, #tpu.memory_space<vmem>>, vector<8x256xf32>
    tpu.vector_store %arg4[%c0_5, %c0_6], %9 {strides = array<i32>} : memref<8x256xf32, #tpu.memory_space<vmem>>, vector<8x256xf32>,
    return
  }
  func.func @transform_0(%arg0: i32) -> (i32, i32) {
    %c0_i32 = arith.constant 0 : i32
    %c0_i32_0 = arith.constant 0 : i32
    return %c0_i32, %arg0 : i32, i32
  }
  func.func @transform_1(%arg0: i32) -> (i32, i32) {
    %c0_i32 = arith.constant 0 : i32
    %c0_i32_0 = arith.constant 0 : i32
    %c0_i32_1 = arith.constant 0 : i32
    return %c0_i32, %c0_i32_0 : i32, i32
  }
  func.func @transform_2(%arg0: i32) -> (i32, i32) {
    %c0_i32 = arith.constant 0 : i32
    %c0_i32_0 = arith.constant 0 : i32
    %c0_i32_1 = arith.constant 0 : i32
    return %c0_i32, %c0_i32_0 : i32, i32
  }
  func.func @transform_3(%arg0: i32) -> (i32, i32) {
    %c0_i32 = arith.constant 0 : i32
    %c0_i32_0 = arith.constant 0 : i32
    return %c0_i32, %arg0 : i32, i32
  }
}

</mosaic_0001>

<bundles_post_ra>
// kernel: basic_conv2d.3
= control target key start
LH: loop header
LB: loop body
LE: loop exit
PB: predicated region body
PF: predicated region fallthrough
CT: control target
= control target key end

     0   :  { %s303_s12 = smov 0   ;;  %s326_s0 = inlined_call_operand.vmem [shape: bf16[8,512], index: 0, kind: input, shape index: {}]   ;;  %s327_s1 = inlined_call_operand.vmem [shape: f32[8,1], index: 1, kind: input, shape index: {}]   ;;  %s328_s2 = inlined_call_operand.vmem [shape: f32[8,1], index: 2, kind: input, shape index: {}]   ;;  %s329_s3 = inlined_call_operand.vmem [shape: f32[8,512], index: 3, kind: output, shape index: {}]  }
   0x1 LB: > { %s253_s13 = sadd.s32 4294967295, %s280_s12   ;;  %p257_p0 = scmp.ge.s32.totalorder %s280_s12, 1  ;;  %s280_s12 = sphi %s303_s12, %s13_s12  }
   0x2   : > { %p138_p1 = scmp.lt.s32.totalorder %s280_s12, 3 }
   0x4   : > { %p139_p2 = pnand %p257_p0, %p138_p1 }
   0x5   : > { %s258_s18 = sshll.u32 (!%p139_p2), %s253_s13, 1 }
   0x6   : > { %142 = sbr.rel (%p139_p2) target bundleno = 142 (0x8e), region = 32  ;;  %p163_p3 = scmp.lt.s32.totalorder (!%p139_p2), %s258_s18, 3 }
   0xb   : > { %v177_v0 = vld [vmem:[%s327_s1] sm:$0xff]  ;;  %v282_v1 = vmov 0   ;;  %s331_s18 = smov (!%p163_p3, %s258_s18), 3 }
   0xc   : > { %273 = vset.pattern.permute.xlu0 %v282_v1  ;;  %v185_v2 = vld [vmem:[%s328_s2] sm:$0xff]  ;;  %s259_s19 = sshll.u32 %s331_s18, 2  ;;  %s261_s23 = sshll.u32 %s331_s18, 3 }
   0xd   : > { %180 = vperm.xlu0 %273, %v177_v0   ;;  %s166_s22 = scalar_lea.vmem %s326_s0, %s259_s19  ;;  %s172_s26 = scalar_lea.vmem %s329_s3, %s261_s23 }
   0xe   : > { %v174_v4 = vld [vmem:[%s166_s22] sm:$0xff] }
   0xf   : > { %v175_v5 = vunpack.c.l.bf16 %v174_v4  ;;  %v176_v6 = vunpack.c.h.bf16 %v174_v4 }
  0x15   : > { %188 = vperm.xlu0 %273, %v185_v2  }
  0x7f   : > { %v181_v3 = vpop.permute.xlu0 %180 }
  0x80   : > { %v183_v7 = vmul.f32 %v181_v3, %v175_v5  ;;  %v184_v8 = vmul.f32 %v181_v3, %v176_v6 }
  0x87   : > { %v189_v9 = vpop.permute.xlu0 %188 }
  0x88   : > { %v191_v10 = vadd.f32 %v189_v9, %v183_v7  ;;  %v192_v11 = vadd.f32 %v189_v9, %v184_v8 }
  0x8a   : > { %v193_v12 = vmax.f32 %v191_v10, 0.0  ;;  %v194_v13 = vmax.f32 %v192_v11, 0.0 }
  0x8c   : > { %195 = vst [vmem:[%s172_s26] sm:$0xff] %v193_v12 }
  0x8d   : > { %196 = vst [vmem:[%s172_s26 + $0x8] sm:$0xff] %v194_v13 }
  0x8e PF: > { %s13_s12 = sadd.s32 1, %s280_s12  }
  0x8f   : > { %p10_p4 = scmp.ge.s32.totalorder %s13_s12, 4  }
  0x91   :  { %12 = sbr.rel (!%p10_p4) target bundleno = 1 (0x1), region = 62 }

// kernel: basic_conv2d.2
= control target key start
LH: loop header
LB: loop body
LE: loop exit
PB: predicated region body
PF: predicated region fallthrough
CT: control target
= control target key end

     0   :  { %s682_s15 = smov 0   ;;  %s684_s16 = smov 0   ;;  %s762_s0 = inlined_call_operand.vmem [shape: bf16[8,48], index: 0, kind: input, shape index: {}]   ;;  %s763_s1 = inlined_call_operand.vmem [shape: bf16[48,512], index: 1, kind: input, shape index: {}]   ;;  %s764_s2 = inlined_call_operand.vmem [shape: bf16[8,512], index: 2, kind: output, shape index: {0}]   ;;  %s765_s3 = inlined_call_operand.vmem [shape: f32[2,8,1], index: 3, kind: output, shape index: {1}]   ;;  %s766_s4 = inlined_call_operand.vmem [shape: f32[2,8,1], index: 4, kind: output, shape index: {2}]  }
   0x1   :  { %s686_s17 = smov 0   ;;  %s688_s18 = smov 0  }
   0x2   :  { %s690_s19 = smov 0  }
   0x3 LB: > { %s27_s20 = sadd.s32 1, %s650_s18  ;;  %p64_p1 = scmp.ne.s32.totalorder %s642_s16, %s638_s15  ;;  %s654_s19 = sphi %s690_s19, %s15_s19   ;;  %s650_s18 = sphi %s688_s18, %s770_s18   ;;  %s646_s17 = sphi %s686_s17, %s769_s17   ;;  %s642_s16 = sphi %s684_s16, %s768_s16   ;;  %s638_s15 = sphi %s682_s15, %s767_s15  }
   0x4   : > { %p29_p0 = scmp.ge.s32.totalorder %s27_s20, 2  ;;  %p65_p2 = scmp.eq.s32.totalorder %s654_s19, 0 }
   0x5   : > { %s57_s22 = sadd.s32 1, %s642_s16  ;;  %p530_p5 = scmp.ge.s32.totalorder %s654_s19, 2 }
   0x6   : > { %s772_s20 = smov (%p29_p0, %s27_s20), 0  ;;  %p66_p3 = por %p65_p2, %p64_p1 }
   0x7   : > { %s54_s21 = ssub.s32 %s650_s18, %s772_s20  ;;  %173 = sbr.rel (%p530_p5) target bundleno = 22 (0x16), region = 20 }
   0x8   : > { %p55_p4 = scmp.eq.s32.totalorder %s54_s21, 0 }
   0xa   : > { %s717_s23 = scalar_select %p55_p4, %s642_s16, %s57_s22  }
   0xc   : > { %176 = sbr.rel (!%p66_p3) target bundleno = 22 (0x16), region = 24  ;;  %s178_s24 = sand.u32 (%p66_p3), 1, %s642_s16  }
   0xd   : > { %s566_s25 = sshll.u32 (%p66_p3), %s650_s18, 3  ;;  %s573_s26 = smul.u32 (%p66_p3), 48, %s178_s24 }
   0xe   : > { %s184_s29 = scalar_lea.vmem (%p66_p3), %s763_s1, %s566_s25 }
   0xf   : > { %v223_v0 = vld [vmem:[%s184_s29] sm:$0xff] (%p66_p3)  ;;  %v225_v1 = vld [vmem:[%s184_s29 + $0x10] sm:$0xff] (%p66_p3)  ;;  %s180_s30 = scalar_lea.vmem (%p66_p3), [#allocation2], %s573_s26 }
  0x10   : > { %v227_v2 = vld [vmem:[%s184_s29 + $0x20] sm:$0xff] (%p66_p3)  ;;  %224 = vst [vmem:[%s180_s30] sm:$0xff] (%p66_p3), %v223_v0  ;;  %v229_v3 = vld [vmem:[%s184_s29 + $0x30] sm:$0xff] (%p66_p3) }
  0x11   : > { %226 = vst [vmem:[%s180_s30 + $0x8] sm:$0xff] %v225_v1  ;;  %v231_v4 = vld [vmem:[%s184_s29 + $0x40] sm:$0xff]  ;;  %v233_v5 = vld [vmem:[%s184_s29 + $0x50] sm:$0xff] }
  0x12   : > { %228 = vst [vmem:[%s180_s30 + $0x10] sm:$0xff] %v227_v2 }
  0x13   : > { %230 = vst [vmem:[%s180_s30 + $0x18] sm:$0xff] %v229_v3 }
  0x14   : > { %232 = vst [vmem:[%s180_s30 + $0x20] sm:$0xff] %v231_v4 }
  0x15   : > { %234 = vst [vmem:[%s180_s30 + $0x28] sm:$0xff] %v233_v5 }
  0x16 PF: > { %p533_p6 = scmp.ge.s32.totalorder %s654_s19, 1  ;;  %p239_p7 = scmp.lt.s32.totalorder %s654_s19, 3 }
  0x18   : > { %p240_p8 = pnand %p533_p6, %p239_p7 }
  0x19   : > { %s246_s5 = sand.u32 (!%p240_p8), 1, %s638_s15   ;;  %p290_p9 = scmp.lt.s32.totalorder (!%p240_p8), %s646_s17, 1 }
  0x1a   : > { %243 = sbr.rel (%p240_p8) target bundleno = 301 (0x12d), region = 62  ;;  %s534_s15 = sshll.u32 (!%p240_p8), %s646_s17, 1 }
  0x1b   : > { %s574_s6 = smul.u32 (!%p240_p8), 48, %s246_s5  ;;  %p284_p10 = scmp.lt.s32.totalorder (!%p240_p8), %s534_s15, 3 }
  0x1d   : > { %s248_s7 = scalar_lea.vmem (!%p240_p8), [#allocation2], %s574_s6 }
  0x1f   : > { %v556_v6 = vld [vmem:[%s248_s7 + $0x20] sm:$0xf]  ;;  %v572_v7 = vld [vmem:[%s248_s7 + $0x24] sm:$0xf0]  ;;  %v571_v8 = vld [vmem:[%s248_s7 + $0x24] sm:$0xf] }
  0x20   : > { %v557_v9 = vor.u32 %v572_v7, %v556_v6  ;;  %v558_v10 = vld [vmem:[%s248_s7 + $0x28] sm:$0xf0]  ;;  %v548_v11 = vld [vmem:[%s248_s7 + $0x10] sm:$0xf]  ;;  %v570_v12 = vld [vmem:[%s248_s7 + $0x14] sm:$0xf0] }
  0x21   : > { %v561_v13 = vor.u32 %v571_v8, %v558_v10  ;;  %v569_v14 = vld [vmem:[%s248_s7 + $0x14] sm:$0xf]  ;;  %v550_v15 = vld [vmem:[%s248_s7 + $0x18] sm:$0xf0]  ;;  %v549_v16 = vor.u32 %v570_v12, %v548_v11  ;;  %v540_v18 = vld [vmem:[%s248_s7] sm:$0xf] }
  0x22   : > { %352 = vmatpush.bf16.msra.mxu0 %v557_v9  ;;  %v553_v17 = vor.u32 %v569_v14, %v550_v15  ;;  %v568_v19 = vld [vmem:[%s248_s7 + $0x4] sm:$0xf0]  ;;  %v567_v20 = vld [vmem:[%s248_s7 + $0x4] sm:$0xf]  ;;  %v542_v21 = vld [vmem:[%s248_s7 + $0x8] sm:$0xf0] }
  0x23   : > { %365 = vmatpush.bf16.msra.mxu1 %v561_v13  ;;  %v541_v22 = vor.u32 %v568_v19, %v540_v18  ;;  %v545_v23 = vor.u32 %v567_v20, %v542_v21  ;;  %v306_v24 = vld [vmem:[%s762_s0] sm:$0xf]  ;;  %vm343_vm0 = vcmask 392192   ;;  %s291_s10 = scalar_select %p290_p9, %s646_s17, 1  ;;  %vm303_vm1 = vcmask 7168  }
  0x24   : > { %v656_v25 = vmov 0.0   ;;  %s774_s15 = smov (!%p284_p10, %s534_s15), 3 }
  0x25   : > { %s536_s11 = sshll.u32 %s291_s10, 3  ;;  %s535_s25 = sshll.u32 %s774_s15, 2 }
  0x26   : > { %353 = vmatpush.bf16.msra.mxu0 %v549_v16  ;;  %s293_s14 = scalar_lea.vmem %s765_s3, %s536_s11  ;;  %s297_s24 = scalar_lea.vmem %s766_s4, %s536_s11 }
  0x27   : > { %366 = vmatpush.bf16.msra.mxu1 %v553_v17  ;;  %304 = vst.msk [vmem:[%s293_s14] sm:$0xff] %vm303_vm1, %v656_v25  ;;  %s287_s28 = scalar_lea.vmem %s764_s2, %s535_s25 }
  0x28   : > { %305 = vst.msk [vmem:[%s297_s24] sm:$0xff] %vm303_vm1, %v656_v25 }
  0x2a   : > { %354 = vmatpush.bf16.msra.mxu0 %v541_v22 }
  0x2b   : > { %367 = vmatpush.bf16.msra.mxu1 %v545_v23 }
  0x2d   : > { %562 = vmatmul.msk.bf16.vlgmr.msra.gmra.mxu0 %vm343_vm0, %v306_v24 }
  0x2e   : > { %563 = vmatmul.msk.bf16.vlgmr.msra.gmra.mxu1 %vm343_vm0, %v306_v24  ;;  %v375_v35 = vld [vmem:[%s293_s14] sm:$0xff] }
  0x2f   : > { %v382_v38 = vld [vmem:[%s297_s24] sm:$0xff] }
  0xaa   : > { %v356_v26 = vpop.f32.mrf.mxu0 }
  0xab   : > { %v369_v27 = vpop.f32.mrf.mxu1  ;;  %v383_v30 = vmul.f32 %v356_v26, %v356_v26 }
  0xac   : > { %v373_v28 = vpack.c.bf16 %v369_v27, %v356_v26  ;;  %v376_v29 = vadd.f32 %v369_v27, %v356_v26  ;;  %v384_v31 = vmul.f32 %v369_v27, %v369_v27 }
  0xae   : > { %374 = vst [vmem:[%s287_s28] sm:$0xff] %v373_v28  ;;  %377 = vadd.xlane.f32.xlu0 %v376_v29  ;;  %v385_v34 = vadd.f32 %v384_v31, %v383_v30 }
  0xb2   : > { %v358_v32 = vpop.f32.mrf.mxu0 }
  0xb3   : > { %v371_v33 = vpop.f32.mrf.mxu1 }
  0xb6   : > { %386 = vadd.xlane.f32.xlu0 %v385_v34 }
 0x121   : > { %v378_v36 = vpop.xlane.xlu0 %377 }
 0x122   : > { %v379_v37 = vadd.f32 %v378_v36, %v375_v35 }
 0x124   : > { %381 = vst.msk [vmem:[%s293_s14] sm:$0xff] %vm303_vm1, %v379_v37 }
 0x129   : > { %v387_v39 = vpop.xlane.xlu0 %386 }
 0x12a   : > { %v388_v40 = vadd.f32 %v387_v39, %v382_v38 }
 0x12c   : > { %389 = vst.msk [vmem:[%s297_s24] sm:$0xff] %vm303_vm1, %v388_v40 }
 0x12d PF: > { %s15_s19 = sadd.s32 1, %s654_s19   ;;  %s767_s15 = smov %s642_s16 }
 0x12e   : > { %p12_p11 = scmp.ge.s32.totalorder %s15_s19, 4   ;;  %s768_s16 = smov %s717_s23 }
 0x12f   : > { %s769_s17 = smov %s650_s18  ;;  %s770_s18 = smov %s772_s20 }
 0x130   :  { %14 = sbr.rel (!%p12_p11) target bundleno = 3 (0x3), region = 129 }

</bundles_post_ra>
